<compile_context>
chip_gen: v7x
topology: tpu7x:2x2x1
jax: 0.10.0
libtpu: 0.0.40
codegen_flags: <defaults>
</compile_context>

<pallas_src>
import functools

import jax
import jax.numpy as jnp
from jax.experimental import pallas as pl
from jax.experimental.pallas import tpu as pltpu


def _round_up(a: int, b: int) -> int:
    return (a + b - 1) // b * b


def _vmem_capacity_bytes() -> int:
    """Physical per-core VMEM; fall back to the smallest current gen (v7x: 64 MiB)."""
    try:
        return int(pltpu.get_tpu_info().vmem_capacity_bytes)
    except Exception:
        return 64 * 1024 * 1024


def _choose_tile(bs: int, num_classes: int, itemsize: int):
    """Pick the batch tile and the scoped-VMEM limit for this TPU generation."""
    vmem_cap = _vmem_capacity_bytes()
    # Scoped limit: 3/4 of physical (v5e/v6e: 96 MiB of 128, v7x: 48 MiB of 64).
    vmem_limit = min((vmem_cap * 3) // 4, 96 * 1024 * 1024)
    # Data budget under that limit (headroom for compiler-internal scratch).
    budget = (vmem_limit * 3) // 4
    # Per-row VMEM bytes: 2 pipeline buffers of x (native dtype) + cached int32
    # class-id iota + ~5 f32 block-sized in-kernel temporaries + small extras.
    per_row = num_classes * (2 * itemsize + 4 + 5 * 4) + 32
    tile_b = budget // max(per_row, 1)
    tile_b = min(tile_b, 32768, _round_up(bs, 8))
    tile_b = max(8, (tile_b // 8) * 8)
    return int(tile_b), int(vmem_limit)


def _make_label_smoothing_kernel(smoothing: float, bs: int, num_classes: int,
                                 tile_b: int, n_inner: int):
    confidence = 1.0 - smoothing
    coef_miss = smoothing / float(num_classes)   # per-class smoothing coefficient

    def kernel(x_ref, t_ref, out_ref, acc_ref, iota_ref):
        o = pl.program_id(0)   # "parallel" outer axis (megacore split on v7x)
        i = pl.program_id(1)   # "arbitrary" reduction axis over batch blocks

        @pl.when(i == 0)
        def _init():
            acc_ref[...] = jnp.zeros_like(acc_ref)
            iota_ref[...] = jax.lax.broadcasted_iota(jnp.int32, iota_ref.shape, 1)

        x = x_ref[...].astype(jnp.float32)          # (tile_b, C)
        t = t_ref[...]                              # (tile_b, 1) int32

        # ---- fused log-softmax statistics (no full logprobs tensor) ----
        m = jnp.max(x, axis=-1, keepdims=True)      # (tile_b, 1)
        s = x - m                                   # (tile_b, C)
        lse = jnp.log(jnp.sum(jnp.exp(s), axis=-1, keepdims=True))   # (tile_b, 1)

        # weight = 3 if target > 0.5 else 1  (targets are non-negative ints)
        weight = jnp.where(t > 0, 3.0, 1.0).astype(jnp.float32)      # (tile_b, 1)
        cw = confidence * weight                                     # (tile_b, 1)

        # Fused one-hot gather + row-mean term: one select/mul/reduce pass.
        #   sum(coef*s) = confidence*weight*s[target] + (smoothing/C)*sum(s)
        coef = jnp.where(iota_ref[...] == t, cw + coef_miss, coef_miss)  # (tile_b, C)
        dot = jnp.sum(coef * s, axis=-1, keepdims=True)                  # (tile_b, 1)

        # loss = conf*weight*(lse - s[t]) + smoothing*(lse - mean(s))
        loss = (cw + smoothing) * lse - dot                              # (tile_b, 1)

        # Mask rows past the true batch (ragged boundary block + overhang blocks).
        blk = o * n_inner + i
        row_ids = blk * tile_b + jax.lax.broadcasted_iota(jnp.int32, loss.shape, 0)
        loss = jnp.where(row_ids < bs, loss, 0.0)

        acc_ref[...] += loss

        @pl.when(i == n_inner - 1)
        def _finalize():
            out_ref[...] = jnp.full(out_ref.shape, jnp.sum(acc_ref[...]),
                                    jnp.float32)

    return kernel


@functools.partial(jax.jit, static_argnames=("smoothing", "tile_b"))
def label_smoothing1(x: jax.Array, target: jax.Array,
                     smoothing: float = 0.1, tile_b=None) -> jax.Array:
    """Pallas equivalent of LabelSmoothing1.forward(x, target). Returns scalar f32."""
    bs, num_classes = x.shape
    assert target.shape == (bs,)

    itemsize = jnp.dtype(x.dtype).itemsize
    auto_tile, vmem_limit = _choose_tile(bs, num_classes, itemsize)
    if tile_b is None:
        tile_b = auto_tile
    else:
        assert tile_b >= 8 and tile_b % 8 == 0

    n_blocks = pl.cdiv(bs, tile_b)
    n_outer = 2 if n_blocks >= 2 else 1     # 2 TCs on v7x; harmless on 1-TC chips
    n_inner = pl.cdiv(n_blocks, n_outer)

    t2d = target.astype(jnp.int32).reshape(bs, 1)

    def in_index_map(o, i):
        # Overhang blocks (n_outer*n_inner > n_blocks) re-read the last valid
        # block; their rows are fully masked inside the kernel.
        return (jnp.minimum(o * n_inner + i, n_blocks - 1), 0)

    kernel = _make_label_smoothing_kernel(float(smoothing), bs, num_classes,
                                          tile_b, n_inner)

    partials = pl.pallas_call(
        kernel,
        out_shape=jax.ShapeDtypeStruct((n_outer, 1, 128), jnp.float32),
        grid=(n_outer, n_inner),
        in_specs=[
            # x ships in its native dtype (bf16 halves HBM traffic); upcast in-kernel.
            pl.BlockSpec((tile_b, num_classes), in_index_map),
            pl.BlockSpec((tile_b, 1), in_index_map),
        ],
        out_specs=pl.BlockSpec((1, 1, 128), lambda o, i: (o, 0, 0)),
        scratch_shapes=[
            pltpu.VMEM((tile_b, 1), jnp.float32),           # per-row loss accumulator
            pltpu.VMEM((tile_b, num_classes), jnp.int32),   # cached class-id iota
        ],
        compiler_params=pltpu.CompilerParams(
            dimension_semantics=("parallel", "arbitrary"),
            vmem_limit_bytes=int(vmem_limit),
        ),
    )(x, t2d)

    # Add the (<=2) per-core partial sums and take the batch mean.
    return jnp.sum(partials[:, 0, 0]) / jnp.float32(bs)


def _reference(x, target, smoothing=0.1):
    """Pure-JAX reference for correctness checking."""
    confidence = 1.0 - smoothing
    weight = jnp.where(target.astype(jnp.float32) > 0.5, 3.0, 1.0)
    logprobs = jax.nn.log_softmax(x.astype(jnp.float32), axis=-1)
    nll = -jnp.take_along_axis(
        logprobs, target[:, None].astype(jnp.int32), axis=-1)[:, 0]
    nll = nll * weight
    smooth = -jnp.mean(logprobs, axis=-1)
    loss = confidence * nll + smoothing * smooth
    return jnp.mean(loss)


if __name__ == "__main__":
    key = jax.random.PRNGKey(0)
    kx, kt = jax.random.split(key)

    bs, num_classes = 8, 16
    smoothing = 0.1

    x = jax.random.normal(kx, (bs, num_classes), dtype=jnp.float32)
    target = jax.random.randint(kt, (bs,), 0, num_classes, dtype=jnp.int32)

    out = jax.block_until_ready(label_smoothing1(x, target, smoothing=smoothing))
    ref = _reference(x, target, smoothing=smoothing)
    assert jnp.allclose(out, ref, atol=1e-5, rtol=1e-5), (out, ref)

    # Non-tile-multiple batch with a forced small tile: exercises the ragged
    # boundary block, the masked overhang block and the 2-D (parallel,arbitrary)
    # grid / per-outer partial-sum path.
    bs2 = 37
    x2 = jax.random.normal(kx, (bs2, num_classes), dtype=jnp.float32)
    t2 = jax.random.randint(kt, (bs2,), 0, num_classes, dtype=jnp.int32)
    out2 = jax.block_until_ready(
        label_smoothing1(x2, t2, smoothing=smoothing, tile_b=8))
    ref2 = _reference(x2, t2, smoothing=smoothing)
    assert jnp.allclose(out2, ref2, atol=1e-5, rtol=1e-5), (out2, ref2)

    print("KERNEL_OK")
</pallas_src>

<mosaic_0001>
module attributes {stable_mosaic.version = 11 : i64} {
  func.func @kernel(%arg0: i32, %arg1: i32, %arg2: memref<8x16xf32, #tpu.memory_space<vmem>>, %arg3: memref<8x1xi32, #tpu.memory_space<vmem>>, %arg4: memref<1x1x128xf32, #tpu.memory_space<vmem>>, %arg5: memref<8x1xf32, #tpu.memory_space<vmem>>, %arg6: memref<8x16xi32, #tpu.memory_space<vmem>>) attributes {dimension_semantics = [#tpu.dimension_semantics<parallel>, #tpu.dimension_semantics<arbitrary>], iteration_bounds = array<i64: 1, 1>, scalar_prefetch = 0 : i64, scratch_operands = 2 : i64, tpu.core_type = #tpu.core_type<tc>, window_params = [{transform_indices = @transform_0, window_bounds = array<i64: 8, 16>}, {transform_indices = @transform_1, window_bounds = array<i64: 8, 1>}, {transform_indices = @transform_2, window_bounds = array<i64: 1, 1, 128>}]} {
    %c0_i32 = arith.constant 0 : i32
    %0 = arith.cmpi eq, %arg1, %c0_i32 : i32
    %1 = arith.extui %0 : i1 to i32
    %c0_i32_0 = arith.constant 0 : i32
    %2 = arith.cmpi ne, %1, %c0_i32_0 : i32
    scf.if %2 {
      %cst_23 = arith.constant 0.000000e+00 : f32
      %52 = vector.broadcast %cst_23 : f32 to vector<8x1xf32>
      %c0_24 = arith.constant 0 : index
      %c0_25 = arith.constant 0 : index
      %53 = vector.load %arg5[%c0_24, %c0_25] : memref<8x1xf32, #tpu.memory_space<vmem>>, vector<8x1xf32>
      tpu.vector_store %arg5[%c0_24, %c0_25], %52 {strides = array<i32>} : memref<8x1xf32, #tpu.memory_space<vmem>>, vector<8x1xf32>,
      %54 = tpu.iota {dimensions = array<i32: 1>} : vector<8x16xi32>
      %c0_26 = arith.constant 0 : index
      %c0_27 = arith.constant 0 : index
      %55 = vector.load %arg6[%c0_26, %c0_27] : memref<8x16xi32, #tpu.memory_space<vmem>>, vector<8x16xi32>
      tpu.vector_store %arg6[%c0_26, %c0_27], %54 {strides = array<i32>} : memref<8x16xi32, #tpu.memory_space<vmem>>, vector<8x16xi32>,
    } else {
    }
    %c0 = arith.constant 0 : index
    %c0_1 = arith.constant 0 : index
    %3 = vector.load %arg2[%c0, %c0_1] : memref<8x16xf32, #tpu.memory_space<vmem>>, vector<8x16xf32>
    %c0_2 = arith.constant 0 : index
    %c0_3 = arith.constant 0 : index
    %4 = vector.load %arg3[%c0_2, %c0_3] : memref<8x1xi32, #tpu.memory_space<vmem>>, vector<8x1xi32>
    %cst = arith.constant dense<0xFF800000> : vector<8xf32>
    %5 = vector.multi_reduction <maximumf>, %3, %cst [1] : vector<8x16xf32> to vector<8xf32>
    %6 = vector.shape_cast %5 : vector<8xf32> to vector<8x1xf32>
    %7 = vector.broadcast %6 : vector<8x1xf32> to vector<8x16xf32>
    %8 = arith.subf %3, %7 : vector<8x16xf32>
    %9 = math.exp %8 : vector<8x16xf32>
    %cst_4 = arith.constant dense<0.000000e+00> : vector<8xf32>
    %10 = vector.multi_reduction <add>, %9, %cst_4 [1] : vector<8x16xf32> to vector<8xf32>
    %11 = vector.shape_cast %10 : vector<8xf32> to vector<8x1xf32>
    %12 = math.log %11 : vector<8x1xf32>
    %c0_i32_5 = arith.constant 0 : i32
    %13 = vector.broadcast %c0_i32_5 : i32 to vector<8x1xi32>
    %14 = arith.cmpi sgt, %4, %13 : vector<8x1xi32>
    %cst_6 = arith.constant 3.000000e+00 : f32
    %cst_7 = arith.constant 1.000000e+00 : f32
    %15 = vector.broadcast %cst_6 : f32 to vector<8x1xf32>
    %16 = vector.broadcast %cst_7 : f32 to vector<8x1xf32>
    %17 = arith.select %14, %15, %16 : vector<8x1xi1>, vector<8x1xf32>
    %cst_8 = arith.constant 0.899999976 : f32
    %18 = vector.broadcast %cst_8 : f32 to vector<8x1xf32>
    %19 = arith.mulf %18, %17 : vector<8x1xf32>
    %c0_9 = arith.constant 0 : index
    %c0_10 = arith.constant 0 : index
    %20 = vector.load %arg6[%c0_9, %c0_10] : memref<8x16xi32, #tpu.memory_space<vmem>>, vector<8x16xi32>
    %21 = vector.broadcast %4 : vector<8x1xi32> to vector<8x16xi32>
    %22 = arith.cmpi eq, %20, %21 : vector<8x16xi32>
    %cst_11 = arith.constant 6.250000e-03 : f32
    %23 = vector.broadcast %cst_11 : f32 to vector<8x1xf32>
    %24 = arith.addf %19, %23 : vector<8x1xf32>
    %cst_12 = arith.constant 6.250000e-03 : f32
    %25 = vector.shape_cast %24 : vector<8x1xf32> to vector<8x1xf32>
    %26 = vector.broadcast %25 : vector<8x1xf32> to vector<8x16xf32>
    %27 = vector.broadcast %cst_12 : f32 to vector<8x16xf32>
    %28 = arith.select %22, %26, %27 : vector<8x16xi1>, vector<8x16xf32>
    %29 = arith.mulf %28, %8 : vector<8x16xf32>
    %cst_13 = arith.constant dense<0.000000e+00> : vector<8xf32>
    %30 = vector.multi_reduction <add>, %29, %cst_13 [1] : vector<8x16xf32> to vector<8xf32>
    %31 = vector.shape_cast %30 : vector<8xf32> to vector<8x1xf32>
    %cst_14 = arith.constant 1.000000e-01 : f32
    %32 = vector.broadcast %cst_14 : f32 to vector<8x1xf32>
    %33 = arith.addf %19, %32 : vector<8x1xf32>
    %34 = arith.mulf %33, %12 : vector<8x1xf32>
    %35 = arith.subf %34, %31 : vector<8x1xf32>
    %c1_i32 = arith.constant 1 : i32
    %36 = arith.muli %arg0, %c1_i32 : i32
    %37 = arith.addi %36, %arg1 : i32
    %c8_i32 = arith.constant 8 : i32
    %38 = arith.muli %37, %c8_i32 : i32
    %39 = tpu.iota {dimensions = array<i32: 0>} : vector<8x1xi32>
    %40 = vector.broadcast %38 : i32 to vector<8x1xi32>
    %41 = arith.addi %40, %39 : vector<8x1xi32>
    %c8_i32_15 = arith.constant 8 : i32
    %42 = vector.broadcast %c8_i32_15 : i32 to vector<8x1xi32>
    %43 = arith.cmpi slt, %41, %42 : vector<8x1xi32>
    %cst_16 = arith.constant 0.000000e+00 : f32
    %44 = vector.broadcast %cst_16 : f32 to vector<8x1xf32>
    %45 = arith.select %43, %35, %44 : vector<8x1xi1>, vector<8x1xf32>
    %c0_17 = arith.constant 0 : index
    %c0_18 = arith.constant 0 : index
    %46 = vector.load %arg5[%c0_17, %c0_18] : memref<8x1xf32, #tpu.memory_space<vmem>>, vector<8x1xf32>
    %47 = arith.addf %46, %45 : vector<8x1xf32>
    %c0_19 = arith.constant 0 : index
    %c0_20 = arith.constant 0 : index
    %48 = vector.load %arg5[%c0_19, %c0_20] : memref<8x1xf32, #tpu.memory_space<vmem>>, vector<8x1xf32>
    tpu.vector_store %arg5[%c0_19, %c0_20], %47 {strides = array<i32>} : memref<8x1xf32, #tpu.memory_space<vmem>>, vector<8x1xf32>,
    %c0_i32_21 = arith.constant 0 : i32
    %49 = arith.cmpi eq, %arg1, %c0_i32_21 : i32
    %50 = arith.extui %49 : i1 to i32
    %c0_i32_22 = arith.constant 0 : i32
    %51 = arith.cmpi ne, %50, %c0_i32_22 : i32
    scf.if %51 {
      %c0_23 = arith.constant 0 : index
      %c0_24 = arith.constant 0 : index
      %52 = vector.load %arg5[%c0_23, %c0_24] : memref<8x1xf32, #tpu.memory_space<vmem>>, vector<8x1xf32>
      %53 = vector.shape_cast %52 : vector<8x1xf32> to vector<1x8x1xf32>
      %cst_25 = arith.constant dense<0.000000e+00> : vector<1xf32>
      %54 = vector.multi_reduction <add>, %53, %cst_25 [1, 2] : vector<1x8x1xf32> to vector<1xf32>
      %55 = vector.shape_cast %54 : vector<1xf32> to vector<1x1x1xf32>
      %56 = vector.extract %55[0, 0, 0] : f32 from vector<1x1x1xf32>
      %57 = vector.broadcast %56 : f32 to vector<1x1x128xf32>
      %c0_26 = arith.constant 0 : index
      %c0_27 = arith.constant 0 : index
      %c0_28 = arith.constant 0 : index
      %58 = vector.load %arg4[%c0_26, %c0_27, %c0_28] : memref<1x1x128xf32, #tpu.memory_space<vmem>>, vector<1x1x128xf32>
      tpu.vector_store %arg4[%c0_26, %c0_27, %c0_28], %57 {strides = array<i32>} : memref<1x1x128xf32, #tpu.memory_space<vmem>>, vector<1x1x128xf32>,
    } else {
    }
    return
  }
  func.func @transform_0(%arg0: i32, %arg1: i32) -> (i32, i32) {
    %c1_i32 = arith.constant 1 : i32
    %0 = arith.muli %arg0, %c1_i32 : i32
    %1 = arith.addi %0, %arg1 : i32
    %c0_i32 = arith.constant 0 : i32
    %2 = arith.minsi %1, %c0_i32 : i32
    %c0_i32_0 = arith.constant 0 : i32
    %c0_i32_1 = arith.constant 0 : i32
    return %2, %c0_i32_0 : i32, i32
  }
  func.func @transform_1(%arg0: i32, %arg1: i32) -> (i32, i32) {
    %c1_i32 = arith.constant 1 : i32
    %0 = arith.muli %arg0, %c1_i32 : i32
    %1 = arith.addi %0, %arg1 : i32
    %c0_i32 = arith.constant 0 : i32
    %2 = arith.minsi %1, %c0_i32 : i32
    %c0_i32_0 = arith.constant 0 : i32
    %c0_i32_1 = arith.constant 0 : i32
    return %2, %c0_i32_0 : i32, i32
  }
  func.func @transform_2(%arg0: i32, %arg1: i32) -> (i32, i32, i32) {
    %c0_i32 = arith.constant 0 : i32
    %c0_i32_0 = arith.constant 0 : i32
    %c0_i32_1 = arith.constant 0 : i32
    return %arg0, %c0_i32, %c0_i32_0 : i32, i32, i32
  }
}

</mosaic_0001>

<bundles_post_ra>
// kernel: label_smoothing1.1
= control target key start
LH: loop header
LB: loop body
LE: loop exit
PB: predicated region body
PF: predicated region fallthrough
CT: control target
= control target key end

     0   :  { %v71_v0 = vlaneseq  ;;  %vm73_vm0 = vcmask 130048   ;;  %v166_v2 = vmov 0   ;;  %v167_v6 = vmov 1.0   ;;  %s197_s0 = inlined_call_operand.vmem [shape: f32[8,16], index: 0, kind: input, shape index: {}]   ;;  %s198_s1 = inlined_call_operand.vmem [shape: s32[8,1], index: 1, kind: input, shape index: {}]   ;;  %s199_s2 = inlined_call_operand.vmem [shape: f32[1,1,128], index: 2, kind: output, shape index: {}]  }
   0x1   :  { %v75_v1 = vld [vmem:[%s197_s0] sm:$0xff]  ;;  %160 = vset.pattern.permute.xlu0 %v166_v2  ;;  %161 = vset.pattern.permute.xlu1 %v166_v2  ;;  %vm69_vm3 = vcmask 7168   ;;  %v168_v21 = vmov 0.0  }
   0x2   :  { %v76_v3 = vld [vmem:[%s198_s1] sm:$0xff]  ;;  %v72_v4 = vand.u32 127, %v71_v0  ;;  %v78_v5 = vsel %vm73_vm0, %v75_v1, -inf  ;;  %70 = vst.msk [vmem:[#allocation2] sm:$0xff] %vm69_vm3, %v168_v21 }
   0x3   :  { %vm89_vm1 = vcmp.gt.s32.totalorder %v76_v3, 0  ;;  %79 = vmax.xlane.f32.xlu0 %v78_v5 }
   0x4   :  { %v90_v7 = vsel %vm89_vm1, 3.0, %v167_v6  ;;  %74 = vst.msk [vmem:[#allocation3] sm:$0xff] %vm73_vm0, %v72_v4 }
   0x5   :  { %v91_v8 = vmul.f32 0.9, %v90_v7 }
   0x7   :  { %v97_v9 = vadd.f32 0.00625, %v91_v8  ;;  %v108_v23 = vadd.f32 0.1, %v91_v8 }
   0x9   :  { %100 = vperm.xlu1 %161, %v97_v9   ;;  %v119_v27 = vld [vmem:[#allocation2] sm:$0xff] }
   0xb   :  { %v92_v13 = vld [vmem:[#allocation3] sm:$0xff] }
  0x19   :  { %94 = vperm.xlu0 %160, %v76_v3  }
  0x88   :  { %v101_v15 = vpop.permute.xlu1 %100 }
  0x90   :  { %v80_v10 = vpop.xlane.xlu0 %79 }
  0x91   :  { %v81_v11 = vsub.f32 %v75_v1, %v80_v10 }
  0x93   :  { %v82_v12 = vmul.f32 1.442695, %v81_v11 }
  0x95   :  { %162 = vpow2.f32 %v82_v12 }
  0x98   :  { %v95_v14 = vpop.permute.xlu0 %94 }
  0x99   :  { %vm96_vm2 = vcmp.eq.s32.totalorder %v92_v13, %v95_v14 }
  0x9a   :  { %v103_v16 = vsel %vm96_vm2, %v101_v15, 0.00625 }
  0x9b   :  { %v104_v18 = vmul.f32 %v103_v16, %v81_v11 }
  0x9d   :  { %v105_v20 = vsel %vm73_vm0, %v104_v18, 0.0 }
  0x9f   :  { %v163_v17 = vpop.eup %162 }
  0xa0   :  { %v84_v19 = vsel %vm73_vm0, %v163_v17, 0.0 }
  0xa1   :  { %85 = vadd.xlane.f32.xlu1 %v84_v19 }
  0xa5   :  { %106 = vadd.xlane.f32.xlu1 %v105_v20 }
 0x12e   :  { %v86_v22 = vpop.xlane.xlu1 %85 }
 0x12f   :  { %164 = vlog2.f32 %v86_v22 }
 0x132   :  { %v107_v28 = vpop.xlane.xlu1 %106 }
 0x139   :  { %v165_v24 = vpop.eup %164 }
 0x13a   :  { %v88_v25 = vmul.f32 0.6931472, %v165_v24 }
 0x13c   :  { %v109_v26 = vmul.f32 %v108_v23, %v88_v25 }
 0x13e   :  { %v110_v29 = vsub.f32 %v109_v26, %v107_v28 }
 0x140   :  { %v120_v30 = vadd.f32 %v119_v27, %v110_v29 }
 0x142   :  { %122 = vst.msk [vmem:[#allocation2] sm:$0xff] %vm69_vm3, %v120_v30 }
 0x149   :  { %v126_v31 = vld [vmem:[#allocation2] sm:$0xff] }
 0x14a   :  { %v127_v32 = vsel %vm69_vm3, %v126_v31, 0.0 }
 0x14b   :  { %128 = vadd.xlane.f32.xlu1 %v127_v32 }
 0x1d8   :  { %v129_v33 = vpop.xlane.xlu1 %128 }
 0x1d9   :  { %v130_v34 = vrot.slane %v129_v33, 4 }
 0x1db   :  { %v131_v35 = vadd.f32 %v130_v34, %v129_v33 }
 0x1dd   :  { %v132_v36 = vrot.slane %v131_v35, 2 }
 0x1df   :  { %v133_v37 = vadd.f32 %v132_v36, %v131_v35 }
 0x1e1   :  { %v134_v38 = vrot.slane %v133_v37, 1 }
 0x1e3   :  { %v135_v39 = vadd.f32 %v134_v38, %v133_v37 }
 0x1e5   :  { %155 = vpush %v135_v39 }
 0x216   :  { %s156_s0 = spop %155 }
 0x217   :  { %v137_v40 = vstv %s156_s0 }
 0x218   :  { %138 = vst [vmem:[%s199_s2] sm:$0x1] %v137_v40 }

</bundles_post_ra>
